<compile_context>
chip_gen: v6e
topology: v6e:2x2x1
jax: 0.10.0
libtpu: 0.0.40
codegen_flags: <defaults>
</compile_context>

<pallas_src>
import jax
import jax.numpy as jnp
from jax.experimental import pallas as pl
from jax.experimental.pallas import tpu as pltpu
from typing import NamedTuple, Tuple


class ModelOutputs(NamedTuple):
    """Minimal stand-in for a HuggingFace model output object."""
    last_hidden_state: jax.Array          # [B, S, H]
    pooler_output: jax.Array              # [B, H]   (unused by Pooler, kept for parity)
    hidden_states: Tuple[jax.Array, ...]  # tuple of [B, S, H]


# ---------------------------------------------------------------------------
# Kernels: masked mean over the sequence axis, accumulated in f32 scratch.
# Grid = (B_tiles, S_tiles); S is the reduction ("arbitrary") axis and the
# output block index does not change along it (accumulator pattern).
# ---------------------------------------------------------------------------

def _avg_kernel(nvb_ref, mask_ref, h_ref, o_ref, num_acc, den_acc):
    b = pl.program_id(0)
    s = pl.program_id(1)

    @pl.when(s == 0)
    def _init():
        num_acc[...] = jnp.zeros_like(num_acc)
        den_acc[...] = jnp.zeros_like(den_acc)

    # Skip compute for S tiles that are entirely padding for this batch tile.
    @pl.when(s < nvb_ref[b])
    def _accumulate():
        mask = mask_ref[...].astype(jnp.float32)                  # (tb, ts)
        h = h_ref[...].astype(jnp.float32)                        # (tb, ts, H)
        num_acc[...] += jnp.sum(h * mask[:, :, None], axis=1)     # (tb, H)
        den_acc[...] += jnp.sum(mask, axis=1, keepdims=True)      # (tb, 1)

    @pl.when(s == pl.num_programs(1) - 1)
    def _finalize():
        # Reciprocal of the tiny (tb,1) denominator + broadcast multiply; the
        # clamp only affects rows whose mask is all zero (e.g. batch padding).
        inv = 1.0 / jnp.maximum(den_acc[...], 1e-9)
        o_ref[...] = (num_acc[...] * inv).astype(o_ref.dtype)


def _avg2_kernel(nvb_ref, mask_ref, h1_ref, h2_ref, o_ref, num_acc, den_acc):
    b = pl.program_id(0)
    s = pl.program_id(1)

    @pl.when(s == 0)
    def _init():
        num_acc[...] = jnp.zeros_like(num_acc)
        den_acc[...] = jnp.zeros_like(den_acc)

    @pl.when(s < nvb_ref[b])
    def _accumulate():
        mask = mask_ref[...].astype(jnp.float32)                   # (tb, ts)
        h = h1_ref[...].astype(jnp.float32) + h2_ref[...].astype(jnp.float32)
        # Fold the /2 into the (tb, ts) mask factor -> saves a (tb, ts, H) mul.
        num_acc[...] += jnp.sum(h * (0.5 * mask)[:, :, None], axis=1)
        den_acc[...] += jnp.sum(mask, axis=1, keepdims=True)

    @pl.when(s == pl.num_programs(1) - 1)
    def _finalize():
        inv = 1.0 / jnp.maximum(den_acc[...], 1e-9)
        o_ref[...] = (num_acc[...] * inv).astype(o_ref.dtype)


# ---------------------------------------------------------------------------
# Tile / VMEM budgeting
# ---------------------------------------------------------------------------

def _round_up(x, m):
    return ((x + m - 1) // m) * m


def _vmem_capacity_bytes():
    try:
        info = pltpu.get_tpu_info()
        cap = int(getattr(info, "vmem_capacity_bytes", 0) or 0)
        if cap > 0:
            return cap
    except Exception:
        pass
    # Conservative fallback = v7x physical VMEM (smallest of v5e/v6e/v7x).
    return 64 * 1024 * 1024


def _select_tiles(B, S, H, n_h, h_itemsize, mask_itemsize, out_itemsize,
                  vmem_target, max_ts=None):
    """Pick (tb, b_pad, ts, s_pad) so that all double-buffered pipelined blocks
    (2 x n_h hidden inputs + mask), the output block and the f32 scratches fit
    within `vmem_target` bytes (lane/sublane padding accounted for)."""
    # Batch tile: 8 (sublane quantum); small B uses the full-extent block,
    # larger non-multiple-of-8 B is zero-padded in the wrapper.
    if B <= 8:
        tb, b_pad = B, B
    else:
        tb, b_pad = 8, _round_up(B, 8)

    Hp = _round_up(H, 128)  # lane padding of the hidden/output last dim
    # Fixed (S-independent) VMEM: double-buffered output block + f32 scratches.
    fixed = 2 * max(tb, 8) * Hp * out_itemsize + max(tb, 8) * Hp * 4 + max(tb, 8) * 128 * 4
    # Bytes consumed per 128 rows of S by the double-buffered pipelined inputs.
    per_unit = 2 * tb * 128 * (n_h * Hp * h_itemsize) + 2 * max(tb, 8) * 128 * mask_itemsize
    units = max(1, (vmem_target - fixed) // max(per_unit, 1))
    ts_cap = int(units) * 128
    if max_ts is not None:
        ts_cap = min(ts_cap, max(128, (int(max_ts) // 128) * 128))

    if ts_cap >= S:
        ts, s_pad = S, S                 # single full-S block, no S padding needed
    else:
        ts = ts_cap                      # multiple of 128 -> legal mask block
        s_pad = _round_up(S, ts)
    return tb, b_pad, ts, s_pad


def _block_bytes(tb, ts, H, n_h, h_itemsize, mask_itemsize, out_itemsize):
    """Upper bound on VMEM used by the pipelined blocks + scratch (with padding)."""
    Hp = _round_up(H, 128)
    tsp = _round_up(max(ts, 8), 8)
    hid = 2 * n_h * tb * tsp * Hp * h_itemsize
    msk = 2 * max(tb, 8) * _round_up(max(ts, 128), 128) * mask_itemsize
    out = 2 * max(tb, 8) * Hp * out_itemsize
    scr = max(tb, 8) * Hp * 4 + max(tb, 8) * 128 * 4
    return hid + msk + out + scr


# ---------------------------------------------------------------------------
# Masked mean over the sequence axis (1 or 2 hidden-state tensors)
# ---------------------------------------------------------------------------

def _masked_avg(attention_mask, hiddens, out_dtype, max_ts=None):
    B, S, H = hiddens[0].shape
    n_h = len(hiddens)
    h_itemsize = jnp.dtype(hiddens[0].dtype).itemsize
    mask_itemsize = jnp.dtype(attention_mask.dtype).itemsize
    out_itemsize = jnp.dtype(out_dtype).itemsize

    vmem_cap = _vmem_capacity_bytes()
    vmem_target = int(vmem_cap * 0.7)      # headroom for compiler internals

    tb, b_pad, ts, s_pad = _select_tiles(
        B, S, H, n_h, h_itemsize, mask_itemsize, out_itemsize, vmem_target, max_ts)

    # Zero-pad batch/sequence so tiles divide evenly; padded mask entries are 0,
    # so padded rows/tokens contribute nothing to numerator or denominator.
    if (b_pad, s_pad) != (B, S):
        attention_mask = jnp.pad(attention_mask, ((0, b_pad - B), (0, s_pad - S)))
        hiddens = [jnp.pad(h, ((0, b_pad - B), (0, s_pad - S), (0, 0))) for h in hiddens]

    nb, ns = b_pad // tb, s_pad // ts

    # Scalar-prefetched per-batch-tile count of S blocks containing any valid
    # token.  Trailing all-padding blocks: their block index is clamped to the
    # last valid one (pipeliner skips the refetch) and compute is pl.when-gated.
    block_any = (attention_mask.reshape(nb, tb, ns, ts) != 0).any(axis=(1, 3))   # (nb, ns)
    last_valid = jnp.max(jnp.where(block_any, jnp.arange(ns)[None, :], -1), axis=1)
    nvb = jnp.maximum(last_valid + 1, 1).astype(jnp.int32)                        # (nb,)

    kernel = _avg_kernel if n_h == 1 else _avg2_kernel

    def mask_map(b, s, nvb_ref):
        return (b, jnp.minimum(s, nvb_ref[b] - 1))

    def hid_map(b, s, nvb_ref):
        return (b, jnp.minimum(s, nvb_ref[b] - 1), 0)

    def out_map(b, s, nvb_ref):
        return (b, 0)

    cost = pl.CostEstimate(
        flops=(2 + n_h) * b_pad * s_pad * H,
        transcendentals=0,
        bytes_accessed=(n_h * b_pad * s_pad * H * h_itemsize
                        + b_pad * s_pad * mask_itemsize
                        + b_pad * H * out_itemsize),
    )

    needed = _block_bytes(tb, ts, H, n_h, h_itemsize, mask_itemsize, out_itemsize)
    vmem_limit = int(min(int(vmem_cap * 0.9), max(needed + (8 << 20), 32 << 20)))

    grid_spec = pltpu.PrefetchScalarGridSpec(
        num_scalar_prefetch=1,
        grid=(nb, ns),
        in_specs=[pl.BlockSpec((tb, ts), mask_map)]
                 + [pl.BlockSpec((tb, ts, H), hid_map)] * n_h,
        out_specs=pl.BlockSpec((tb, H), out_map),
        scratch_shapes=[pltpu.VMEM((tb, H), jnp.float32),
                        pltpu.VMEM((tb, 1), jnp.float32)],
    )

    pooled = pl.pallas_call(
        kernel,
        out_shape=jax.ShapeDtypeStruct((b_pad, H), out_dtype),
        grid_spec=grid_spec,
        compiler_params=pltpu.CompilerParams(
            dimension_semantics=("parallel", "arbitrary"),
            vmem_limit_bytes=vmem_limit),
        cost_estimate=cost,
    )(nvb, attention_mask, *hiddens)

    return pooled[:B] if b_pad != B else pooled


# ---------------------------------------------------------------------------
# Wrapper mirroring Pooler.forward(attention_mask, outputs)
# ---------------------------------------------------------------------------

def pooler_forward(pooler_type: str, attention_mask: jax.Array, outputs: ModelOutputs,
                   _max_ts=None):
    assert pooler_type in ['cls', 'cls_before_pooler', 'avg', 'avg_top2',
                           'avg_first_last'], 'unrecognized pooling type %s' % pooler_type

    last_hidden = outputs.last_hidden_state
    hidden_states = outputs.hidden_states
    out_dtype = last_hidden.dtype

    if pooler_type in ('cls', 'cls_before_pooler'):
        # Plain XLA slice — wrapping this in a pallas_call would DMA the whole
        # [B, S, H] tensor for nothing.
        return last_hidden[:, 0, :]
    elif pooler_type == 'avg':
        return _masked_avg(attention_mask, [last_hidden], out_dtype, max_ts=_max_ts)
    elif pooler_type == 'avg_first_last':
        return _masked_avg(attention_mask,
                           [hidden_states[1], hidden_states[-1]], out_dtype,
                           max_ts=_max_ts)
    else:  # 'avg_top2'
        return _masked_avg(attention_mask,
                           [hidden_states[-1], hidden_states[-2]], out_dtype,
                           max_ts=_max_ts)


# ---------------------------------------------------------------------------
# Pure-JAX reference for verification
# ---------------------------------------------------------------------------

def pooler_ref(pooler_type, attention_mask, outputs):
    last_hidden = outputs.last_hidden_state
    hidden_states = outputs.hidden_states
    m = attention_mask.astype(last_hidden.dtype)
    if pooler_type in ('cls', 'cls_before_pooler'):
        return last_hidden[:, 0]
    if pooler_type == 'avg':
        return (last_hidden * m[..., None]).sum(1) / m.sum(-1)[..., None]
    if pooler_type == 'avg_first_last':
        h = (hidden_states[1] + hidden_states[-1]) / 2.0
        return (h * m[..., None]).sum(1) / m.sum(-1)[..., None]
    if pooler_type == 'avg_top2':
        h = (hidden_states[-1] + hidden_states[-2]) / 2.0
        return (h * m[..., None]).sum(1) / m.sum(-1)[..., None]
    raise NotImplementedError


# ---------------------------------------------------------------------------
# Self-test
# ---------------------------------------------------------------------------

def _run_checks(B, S, H, n_layers, lengths, max_ts=None, tag=""):
    key = jax.random.PRNGKey(0)
    keys = jax.random.split(key, n_layers + 1)
    hidden_states = tuple(
        jax.random.normal(keys[i], (B, S, H), dtype=jnp.float32)
        for i in range(n_layers))
    last_hidden_state = hidden_states[-1]
    pooler_output = jax.random.normal(keys[-1], (B, H), dtype=jnp.float32)
    attention_mask = (jnp.arange(S)[None, :]
                      < jnp.asarray(lengths, dtype=jnp.int32)[:, None]).astype(jnp.int32)

    outputs = ModelOutputs(
        last_hidden_state=last_hidden_state,
        pooler_output=pooler_output,
        hidden_states=hidden_states,
    )

    ok = True
    for ptype in ['cls', 'cls_before_pooler', 'avg', 'avg_first_last', 'avg_top2']:
        got = pooler_forward(ptype, attention_mask, outputs, _max_ts=max_ts)
        got = jax.block_until_ready(got)
        want = pooler_ref(ptype, attention_mask, outputs)
        if not jnp.allclose(got, want, atol=1e-5, rtol=1e-5):
            ok = False
            print(f"MISMATCH {tag} pooler_type={ptype}")
    return ok


if __name__ == "__main__":
    ok = True
    # Small canonical shapes (batch=2, seq=8, hidden=32), 4 "layers".
    ok &= _run_checks(B=2, S=8, H=32, n_layers=4, lengths=[6, 8], tag="small")
    # Exercise batch padding (B=9 -> 16), S tiling (ts forced to 128) and the
    # scalar-prefetch skip of trailing padding-only S tiles.
    ok &= _run_checks(B=9, S=384, H=128, n_layers=3,
                      lengths=[5, 40, 130, 200, 384, 7, 256, 300, 1],
                      max_ts=128, tag="tiled")

    if ok:
        print("KERNEL_OK")
</pallas_src>

<mosaic_0001>
module attributes {stable_mosaic.version = 11 : i64} {
  func.func @_avg_kernel(%arg0: i32, %arg1: i32, %arg2: memref<1xi32, #tpu.memory_space<smem>>, %arg3: memref<2x8xi32, #tpu.memory_space<vmem>>, %arg4: memref<2x8x32xf32, #tpu.memory_space<vmem>>, %arg5: memref<2x32xf32, #tpu.memory_space<vmem>>, %arg6: memref<2x32xf32, #tpu.memory_space<vmem>>, %arg7: memref<2x1xf32, #tpu.memory_space<vmem>>) attributes {dimension_semantics = [#tpu.dimension_semantics<parallel>, #tpu.dimension_semantics<arbitrary>], iteration_bounds = array<i64: 1, 1>, scalar_prefetch = 1 : i64, scratch_operands = 2 : i64, tpu.core_type = #tpu.core_type<tc>, window_params = [{transform_indices = @transform_0, window_bounds = array<i64: 2, 8>}, {transform_indices = @transform_1, window_bounds = array<i64: 2, 8, 32>}, {transform_indices = @transform_2, window_bounds = array<i64: 2, 32>}]} {
    %c0_i32 = arith.constant 0 : i32
    %0 = arith.cmpi eq, %arg1, %c0_i32 : i32
    %1 = arith.extui %0 : i1 to i32
    %c0_i32_0 = arith.constant 0 : i32
    %2 = arith.cmpi ne, %1, %c0_i32_0 : i32
    scf.if %2 {
      %cst = arith.constant 0.000000e+00 : f32
      %11 = vector.broadcast %cst : f32 to vector<2x32xf32>
      %c0 = arith.constant 0 : index
      %c0_4 = arith.constant 0 : index
      %12 = vector.load %arg6[%c0, %c0_4] : memref<2x32xf32, #tpu.memory_space<vmem>>, vector<2x32xf32>
      tpu.vector_store %arg6[%c0, %c0_4], %11 {strides = array<i32>} : memref<2x32xf32, #tpu.memory_space<vmem>>, vector<2x32xf32>,
      %cst_5 = arith.constant 0.000000e+00 : f32
      %13 = vector.broadcast %cst_5 : f32 to vector<2x1xf32>
      %c0_6 = arith.constant 0 : index
      %c0_7 = arith.constant 0 : index
      %14 = vector.load %arg7[%c0_6, %c0_7] : memref<2x1xf32, #tpu.memory_space<vmem>>, vector<2x1xf32>
      tpu.vector_store %arg7[%c0_6, %c0_7], %13 {strides = array<i32>} : memref<2x1xf32, #tpu.memory_space<vmem>>, vector<2x1xf32>,
    } else {
    }
    %3 = arith.index_cast %arg0 : i32 to index
    %4 = memref.load %arg2[%3] : memref<1xi32, #tpu.memory_space<smem>>
    %5 = arith.cmpi slt, %arg1, %4 : i32
    %6 = arith.extui %5 : i1 to i32
    %c0_i32_1 = arith.constant 0 : i32
    %7 = arith.cmpi ne, %6, %c0_i32_1 : i32
    scf.if %7 {
      %c0 = arith.constant 0 : index
      %c0_4 = arith.constant 0 : index
      %11 = vector.load %arg3[%c0, %c0_4] : memref<2x8xi32, #tpu.memory_space<vmem>>, vector<2x8xi32>
      %12 = arith.sitofp %11 : vector<2x8xi32> to vector<2x8xf32>
      %c0_5 = arith.constant 0 : index
      %c0_6 = arith.constant 0 : index
      %c0_7 = arith.constant 0 : index
      %13 = vector.load %arg4[%c0_5, %c0_6, %c0_7] : memref<2x8x32xf32, #tpu.memory_space<vmem>>, vector<2x8x32xf32>
      %c0_8 = arith.constant 0 : index
      %c0_9 = arith.constant 0 : index
      %14 = vector.load %arg6[%c0_8, %c0_9] : memref<2x32xf32, #tpu.memory_space<vmem>>, vector<2x32xf32>
      %15 = vector.shape_cast %12 : vector<2x8xf32> to vector<2x8x1xf32>
      %16 = vector.broadcast %15 : vector<2x8x1xf32> to vector<2x8x32xf32>
      %17 = arith.mulf %13, %16 : vector<2x8x32xf32>
      %cst = arith.constant dense<0.000000e+00> : vector<2x32xf32>
      %18 = vector.multi_reduction <add>, %17, %cst [1] : vector<2x8x32xf32> to vector<2x32xf32>
      %19 = arith.addf %14, %18 : vector<2x32xf32>
      %c0_10 = arith.constant 0 : index
      %c0_11 = arith.constant 0 : index
      %20 = vector.load %arg6[%c0_10, %c0_11] : memref<2x32xf32, #tpu.memory_space<vmem>>, vector<2x32xf32>
      tpu.vector_store %arg6[%c0_10, %c0_11], %19 {strides = array<i32>} : memref<2x32xf32, #tpu.memory_space<vmem>>, vector<2x32xf32>,
      %c0_12 = arith.constant 0 : index
      %c0_13 = arith.constant 0 : index
      %21 = vector.load %arg7[%c0_12, %c0_13] : memref<2x1xf32, #tpu.memory_space<vmem>>, vector<2x1xf32>
      %cst_14 = arith.constant dense<0.000000e+00> : vector<2xf32>
      %22 = vector.multi_reduction <add>, %12, %cst_14 [1] : vector<2x8xf32> to vector<2xf32>
      %23 = vector.shape_cast %22 : vector<2xf32> to vector<2x1xf32>
      %24 = arith.addf %21, %23 : vector<2x1xf32>
      %c0_15 = arith.constant 0 : index
      %c0_16 = arith.constant 0 : index
      %25 = vector.load %arg7[%c0_15, %c0_16] : memref<2x1xf32, #tpu.memory_space<vmem>>, vector<2x1xf32>
      tpu.vector_store %arg7[%c0_15, %c0_16], %24 {strides = array<i32>} : memref<2x1xf32, #tpu.memory_space<vmem>>, vector<2x1xf32>,
    } else {
    }
    %c0_i32_2 = arith.constant 0 : i32
    %8 = arith.cmpi eq, %arg1, %c0_i32_2 : i32
    %9 = arith.extui %8 : i1 to i32
    %c0_i32_3 = arith.constant 0 : i32
    %10 = arith.cmpi ne, %9, %c0_i32_3 : i32
    scf.if %10 {
      %c0 = arith.constant 0 : index
      %c0_4 = arith.constant 0 : index
      %11 = vector.load %arg7[%c0, %c0_4] : memref<2x1xf32, #tpu.memory_space<vmem>>, vector<2x1xf32>
      %cst = arith.constant 9.99999971E-10 : f32
      %12 = vector.broadcast %cst : f32 to vector<2x1xf32>
      %13 = arith.maximumf %11, %12 : vector<2x1xf32>
      %cst_5 = arith.constant 1.000000e+00 : f32
      %14 = vector.broadcast %cst_5 : f32 to vector<2x1xf32>
      %15 = arith.divf %14, %13 : vector<2x1xf32>
      %c0_6 = arith.constant 0 : index
      %c0_7 = arith.constant 0 : index
      %16 = vector.load %arg6[%c0_6, %c0_7] : memref<2x32xf32, #tpu.memory_space<vmem>>, vector<2x32xf32>
      %17 = vector.broadcast %15 : vector<2x1xf32> to vector<2x32xf32>
      %18 = arith.mulf %16, %17 : vector<2x32xf32>
      %c0_8 = arith.constant 0 : index
      %c0_9 = arith.constant 0 : index
      %19 = vector.load %arg5[%c0_8, %c0_9] : memref<2x32xf32, #tpu.memory_space<vmem>>, vector<2x32xf32>
      tpu.vector_store %arg5[%c0_8, %c0_9], %18 {strides = array<i32>} : memref<2x32xf32, #tpu.memory_space<vmem>>, vector<2x32xf32>,
    } else {
    }
    return
  }
  func.func @transform_0(%arg0: i32, %arg1: i32, %arg2: memref<1xi32, #tpu.memory_space<smem>>) -> (i32, i32) {
    %0 = arith.index_cast %arg0 : i32 to index
    %1 = memref.load %arg2[%0] : memref<1xi32, #tpu.memory_space<smem>>
    %c1_i32 = arith.constant 1 : i32
    %2 = arith.subi %1, %c1_i32 : i32
    %3 = arith.minsi %arg1, %2 : i32
    %c0_i32 = arith.constant 0 : i32
    return %arg0, %3 : i32, i32
  }
  func.func @transform_1(%arg0: i32, %arg1: i32, %arg2: memref<1xi32, #tpu.memory_space<smem>>) -> (i32, i32, i32) {
    %0 = arith.index_cast %arg0 : i32 to index
    %1 = memref.load %arg2[%0] : memref<1xi32, #tpu.memory_space<smem>>
    %c1_i32 = arith.constant 1 : i32
    %2 = arith.subi %1, %c1_i32 : i32
    %3 = arith.minsi %arg1, %2 : i32
    %c0_i32 = arith.constant 0 : i32
    %c0_i32_0 = arith.constant 0 : i32
    return %arg0, %3, %c0_i32 : i32, i32, i32
  }
  func.func @transform_2(%arg0: i32, %arg1: i32, %arg2: memref<1xi32, #tpu.memory_space<smem>>) -> (i32, i32) {
    %c0_i32 = arith.constant 0 : i32
    %c0_i32_0 = arith.constant 0 : i32
    return %arg0, %c0_i32 : i32, i32
  }
}

</mosaic_0001>

<bundles_post_ra>
// kernel: tpu_custom_call.1
= control target key start
LH: loop header
LB: loop body
LE: loop exit
PB: predicated region body
PF: predicated region fallthrough
CT: control target
= control target key end

     0   :  { %9 = vsyncpa [#allocation7], 0  ;;  %s297_s0 = inlined_call_operand.<no memory space> [shape: s32[1], index: 0, kind: input, shape index: {}]   ;;  %s298_s1 = inlined_call_operand.vmem [shape: s32[2,8], index: 1, kind: input, shape index: {}]   ;;  %s299_s2 = inlined_call_operand.hbm [shape: f32[2,8,32], index: 2, kind: input, shape index: {}]   ;;  %s300_s3 = inlined_call_operand.hbm [shape: f32[2,32], index: 3, kind: output, shape index: {}]  }
   0x1   :  { %10 = vsyncpa [#allocation8], 0  ;;  %s269_s14 = sadd.s32 4294967295, %s297_s0  ;;  %s240_s15 = smov [#allocation6]  }
   0x2   :  { %p175_p0 = scmp.gt.s32.totalorder %s269_s14, 0  ;;  %s36_s16 = sshll.u32 %s240_s15, 4  ;;  %s37_s16 = int_to_ptr.vmem [resolvable:$true] %s36_s16 }
   0x3   :  { %s196_s25 = scalar_lea.hbm %s299_s2, 256 }
   0x4   :  { %s30_s17 = scalar_select %p175_p0, 0, %s269_s14 }
   0x6   :  { %s176_s18 = sshll.u32 %s30_s17, 7 }
   0x7   :  { %s35_s21 = scalar_lea.hbm %s299_s2, %s176_s18 }
   0x8   :  { %s194_s22 = scalar_lea.hbm %s35_s21, 256  ;;  %p197_p2 = scmp.lt.s32.totalorder %s35_s21, %s299_s2 }
   0x9   :  { %p195_p1 = scmp.ne.s32.totalorder %s35_s21, %s194_s22  ;;  %p198_p3 = scmp.lt.s32.totalorder %s196_s25, %s194_s22 }
   0xb   :  { %p199_p4 = por %p198_p3, %p197_p2 }
   0xd   :  { %p200_p5 = pnand %p199_p4, %p195_p1 }
   0xf   :  { %203 = shalt.err (!%p200_p5)
}
  0x10   :  { %s204_s28 = scalar_lea.vmem %s37_s16, 256  ;;  %p209_p7 = scmp.lt.s32.totalorder %s37_s16, %s37_s16 }
  0x11   :  { %p205_p6 = scmp.ne.s32.totalorder %s37_s16, %s204_s28  ;;  %p210_p8 = scmp.lt.s32.totalorder %s204_s28, %s204_s28 }
  0x13   :  { %p211_p9 = por %p210_p8, %p209_p7 }
  0x15   :  { %p212_p10 = pnand %p211_p9, %p205_p6 }
  0x17   :  { %215 = shalt.err (!%p212_p10)
}
  0x18   :  { %s241_s29 = smov 128   ;;  %s242_s30 = smov 8  }
  0x19   :  { %42 = dma.hbm_to_vmem [thread:$0]  %s35_s21, 256, %s37_s16, [#allocation7], %s241_s29, %s241_s29, %s242_s30  }
  0x1a   :  { %236 = dma.done.wait [#allocation7], 256  }
  0x1b   :  { %237 = vsyncadd [#allocation7], 4294967040  ;;  %p180_p11 = scmp.lt.s32.totalorder %s269_s14, 0  ;;  %vm74_vm0 = vcmask 254976   ;;  %vm76_vm1 = vcmask 1024   ;;  %v243_v0 = vmov 0.0  }
  0x1c   :  { %75 = vst.msk [vmem:[#allocation2] sm:$0x3] %vm74_vm0, %v243_v0  ;;  %p184_p12 = scmp.le.s32.totalorder %s297_s0, 0 }
  0x1d   :  { %77 = vst.msk [vmem:[#allocation3] sm:$0x3] %vm76_vm1, %v243_v0  ;;  %s302_s17 = smov (!%p180_p11, %s30_s17), 0 }
  0x1e   :  { %s182_s2 = sshll.u32 %s302_s17, 1  ;;  %82 = sbr.rel (%p184_p12) target bundleno = 181 (0xb5), region = 21 }
  0x1f   :  { %s61_s6 = scalar_lea.vmem %s298_s1, %s182_s2 }
  0x23   :  { %v83_v1 = vld [vmem:[%s61_s6] sm:$0x3]  ;;  %vm128_vm2 = vcmask 58368   ;;  %v88_v2 = vlaneseq  ;;  %v85_v10 = vld [vmem:[#allocation6] sm:$0xff]  ;;  %vm104_vm3 = vcmask 261120   ;;  %v86_v13 = vld [vmem:[#allocation6 + $0x8] sm:$0xff] }
  0x24   :  { %v84_v3 = vcvt.s32.f32 %v83_v1  ;;  %vm121_vm4 = vcmask 1041409   ;;  %v127_v28 = vld [vmem:[#allocation3] sm:$0x3]  ;;  %v87_v30 = vld [vmem:[#allocation2] sm:$0x3] }
  0x25   :  { %v89_v4 = vshrl.u32 %v88_v2, 7 }
  0x26   :  { %v129_v5 = vsel %vm128_vm2, %v84_v3, 0.0 }
  0x27   :  { %130 = vadd.xlane.f32.xlu1 %v129_v5  ;;  %v90_v6 = vsub.s32 0, %v89_v4  ;;  %v97_v7 = vsub.s32 1, %v89_v4 }
  0x29   :  { %v91_v8 = vrot.slane %v84_v3, %v90_v6  ;;  %v98_v9 = vrot.slane %v84_v3, %v97_v7 }
  0x2b   :  { %93 = vbcast.lane.b32.xlu0 %v91_v8, 256 }
  0x2f   :  { %100 = vbcast.lane.b32.xlu0 %v98_v9, 256 }
  0x9d   :  { %v94_v11 = vpop.permute.xlu0 %93 }
  0x9e   :  { %v102_v12 = vmul.f32 %v94_v11, %v85_v10 }
  0xa0   :  { %v105_v14 = vsel %vm104_vm3, %v102_v12, 0.0 }
  0xa1   :  { %v106_v15 = vrot.slane %v105_v14, 4  ;;  %v101_v16 = vpop.permute.xlu0 %100 }
  0xa2   :  { %v103_v17 = vmul.f32 %v101_v16, %v86_v13 }
  0xa3   :  { %v107_v18 = vadd.f32 %v106_v15, %v105_v14 }
  0xa4   :  { %v112_v19 = vsel %vm104_vm3, %v103_v17, 0.0 }
  0xa5   :  { %v108_v20 = vrot.slane %v107_v18, 2  ;;  %v113_v21 = vrot.slane %v112_v19, 4 }
  0xa7   :  { %v109_v22 = vadd.f32 %v108_v20, %v107_v18  ;;  %v114_v23 = vadd.f32 %v113_v21, %v112_v19 }
  0xa9   :  { %v115_v24 = vrot.slane %v114_v23, 2  ;;  %v110_v25 = vrot.slane %v109_v22, 1 }
  0xab   :  { %v116_v26 = vadd.f32 %v115_v24, %v114_v23  ;;  %v111_v29 = vadd.f32 %v110_v25, %v109_v22 }
  0xad   :  { %v117_v27 = vrot.slane %v116_v26, 1 }
  0xaf   :  { %v118_v31 = vadd.f32 %v117_v27, %v116_v26 }
  0xb0   :  { %v131_v32 = vpop.xlane.xlu1 %130 }
  0xb1   :  { %v122_v33 = vsel %vm121_vm4, %v118_v31, %v111_v29  ;;  %v132_v34 = vadd.f32 %v131_v32, %v127_v28 }
  0xb2   :  { %v124_v35 = vadd.f32 %v122_v33, %v87_v30 }
  0xb3   :  { %134 = vst.msk [vmem:[#allocation3] sm:$0x3] %vm76_vm1, %v132_v34 }
  0xb4   :  { %126 = vst.msk [vmem:[#allocation2] sm:$0x3] %vm74_vm0, %v124_v35 }
  0xb5 PF:  { %v244_v37 = vmov 0   ;;  %s245_s0 = smov [#allocation9]  }
  0xb6   :  { %191 = vset.pattern.permute.xlu0 %v244_v37  ;;  %s157_s1 = sshll.u32 %s245_s0, 4  ;;  %s158_s1 = int_to_ptr.vmem [resolvable:$true] %s157_s1 }
  0xb7   :  { %s216_s9 = scalar_lea.vmem %s158_s1, 32  ;;  %p221_p0 = scmp.lt.s32.totalorder %s158_s1, %s158_s1 }
  0xb8   :  { %p217_p13 = scmp.ne.s32.totalorder %s158_s1, %s216_s9  ;;  %p222_p1 = scmp.lt.s32.totalorder %s216_s9, %s216_s9 }
  0xba   :  { %v138_v36 = vld [vmem:[#allocation3] sm:$0x3]  ;;  %p223_p2 = por %p222_p1, %p221_p0 }
  0xbb   :  { %v139_v38 = vmax.f32 %v138_v36, 1e-09  ;;  %v142_v40 = vld [vmem:[#allocation2] sm:$0x3] }
  0xbc   :  { %p224_p3 = pnand %p223_p2, %p217_p13 }
  0xbd   :  { %192 = vrcp.f32 %v139_v38 }
  0xca   :  { %v193_v39 = vpop.eup %192 }
  0xcb   :  { %145 = vperm.xlu0 %191, %v193_v39  }
 0x146   :  { %v146_v41 = vpop.permute.xlu0 %145 }
 0x147   :  { %v148_v42 = vmul.f32 %v146_v41, %v142_v40 }
 0x149   :  { %150 = vst.msk [vmem:[#allocation9] sm:$0x3] %vm74_vm0, %v148_v42 }
 0x14a   :  { %227 = shalt.err (!%p224_p3)
}
 0x14b   :  { %160 = dma.vmem_to_hbm [thread:$0]  %s158_s1, 32, %s300_s3, [#allocation8]  }
 0x14c   :  { %238 = dma.done.wait [#allocation8], 32  }
 0x14d   :  { %239 = vsyncadd [#allocation8], 4294967264 }
 0x14e   :  { %164 = vsyncpa [#allocation7], 1 }
 0x14f   :  { %165 = vsyncpa [#allocation8], 1 }

</bundles_post_ra>
